<compile_context>
chip_gen: v7x
topology: tpu7x:2x2x1
jax: 0.10.0
libtpu: 0.0.40
codegen_flags: <defaults>
</compile_context>

<pallas_src>
import functools

import jax
import jax.numpy as jnp
from jax.experimental import pallas as pl
from jax.experimental.pallas import tpu as pltpu

NUM_FEATURES = 9
VOCAB = 100
VOCAB_PAD = 128  # lane-aligned per-feature vocab (zero-padded rows never selected)


def _round_up(a: int, b: int) -> int:
    return (a + b - 1) // b * b


def _atom_encoder_kernel(x_ref, tbl_ref, out_ref):
    # x_ref  : (TILE_N, F)            int32 node-feature indices, each in [0, 100)
    # tbl_ref: (F, VOCAB_PAD, H)      float32 zero-padded embedding tables
    # out_ref: (TILE_N, H)            float32 sum of per-feature embeddings
    x = x_ref[...]                                      # (TN, F)
    tn, num_feat = x.shape
    vocab_pad = tbl_ref.shape[1]
    h = tbl_ref.shape[2]

    # Lane iota over a single 128-wide vocab slice (reused for every feature).
    lane_iota = jax.lax.broadcasted_iota(jnp.int32, (tn, vocab_pad), 1)

    acc = jnp.zeros((tn, h), dtype=jnp.float32)
    for i in range(num_feat):                           # unrolled, static trip count
        # One-hot only over this feature's own 128-lane slice; cast once.
        onehot = (x[:, i : i + 1] == lane_iota).astype(jnp.float32)   # (TN, 128)
        # K=128 matmul maps exactly onto the MXU; accumulate in f32.
        acc = acc + jnp.dot(onehot, tbl_ref[i],
                            preferred_element_type=jnp.float32)
    out_ref[...] = acc


@functools.partial(jax.jit, static_argnames=("tile_n",))
def atom_encoder_forward(x, tables, tile_n=512):
    """x: [N] or [N, F] integer indices; tables: [NUM_FEATURES, VOCAB, H] f32."""
    if x.ndim == 1:
        x = x[:, None]
    x = x.astype(jnp.int32)
    n, f = x.shape
    _, vocab, h = tables.shape

    # Zero-pad each feature's vocab to 128 rows (padded rows are never selected).
    tbl = jnp.pad(tables[:f], ((0, 0), (0, VOCAB_PAD - vocab), (0, 0)))

    # Row tile: default 512, multiple of 8, never (much) larger than N itself.
    tile = _round_up(min(tile_n, _round_up(n, 8)), 8)
    n_pad = _round_up(n, tile)
    if n_pad != n:
        x = jnp.pad(x, ((0, n_pad - n), (0, 0)))        # padded rows sliced off below

    grid = (n_pad // tile,)

    # Explicit VMEM budget: 2x table (double-buffered), 2x in/out tiles, one-hot
    # temporaries, plus headroom.  Clamped so it stays well inside v7x's 64 MiB.
    table_bytes = f * VOCAB_PAD * h * 4
    out_tile_bytes = tile * h * 4
    in_tile_bytes = tile * f * 4
    onehot_bytes = tile * VOCAB_PAD * 4
    est = (2 * table_bytes + 2 * out_tile_bytes + 2 * in_tile_bytes
           + 2 * onehot_bytes + (4 << 20))
    vmem_limit = int(min(max(est, 16 << 20), 48 << 20))

    out = pl.pallas_call(
        _atom_encoder_kernel,
        out_shape=jax.ShapeDtypeStruct((n_pad, h), jnp.float32),
        grid_spec=pltpu.PrefetchScalarGridSpec(
            num_scalar_prefetch=0,
            grid=grid,
            in_specs=[
                pl.BlockSpec((tile, f), lambda i: (i, 0)),              # index tile
                pl.BlockSpec((f, VOCAB_PAD, h), lambda i: (0, 0, 0)),   # full tables
            ],
            out_specs=pl.BlockSpec((tile, h), lambda i: (i, 0)),
        ),
        compiler_params=pltpu.CompilerParams(
            dimension_semantics=("parallel",),
            vmem_limit_bytes=vmem_limit,
        ),
    )(x, tbl)
    return out[:n]


def init_atom_encoder_params(key, hidden_channels):
    # torch.nn.Embedding default init: N(0, 1)
    return jax.random.normal(
        key, (NUM_FEATURES, VOCAB, hidden_channels), dtype=jnp.float32
    )


def _reference(x, tables):
    if x.ndim == 1:
        x = x[:, None]
    out = jnp.zeros((x.shape[0], tables.shape[-1]), dtype=jnp.float32)
    for i in range(x.shape[1]):
        out = out + tables[i][x[:, i]]
    return out


if __name__ == "__main__":
    key = jax.random.PRNGKey(0)
    k_tbl, k_x, k_x2 = jax.random.split(key, 3)

    hidden = 32
    n_nodes = 8

    tables = init_atom_encoder_params(k_tbl, hidden)
    x = jax.random.randint(k_x, (n_nodes, NUM_FEATURES), 0, VOCAB, dtype=jnp.int32)

    # Small 2-D input (matches the PyTorch forward with all 9 features).
    out = jax.block_until_ready(atom_encoder_forward(x, tables))
    ref = _reference(x, tables)
    assert out.shape == (n_nodes, hidden)
    assert jnp.allclose(out, ref, atol=1e-5), "mismatch vs reference (small)"

    # 1-D input path (x.dim() == 1 -> unsqueeze(1), uses only table 0).
    out1d = jax.block_until_ready(atom_encoder_forward(x[:, 0], tables))
    assert jnp.allclose(out1d, tables[0][x[:, 0]], atol=1e-5), "1-D path mismatch"

    # Larger N to exercise row tiling, padding, and the multi-step parallel grid.
    n_big = 300
    x_big = jax.random.randint(k_x2, (n_big, NUM_FEATURES), 0, VOCAB, dtype=jnp.int32)
    out_big = jax.block_until_ready(atom_encoder_forward(x_big, tables, tile_n=256))
    assert jnp.allclose(out_big, _reference(x_big, tables), atol=1e-5), \
        "mismatch vs reference (tiled)"

    print("KERNEL_OK")
</pallas_src>

<mosaic_0001>
module attributes {stable_mosaic.version = 11 : i64} {
  func.func @_atom_encoder_kernel(%arg0: i32, %arg1: memref<8x9xi32, #tpu.memory_space<vmem>>, %arg2: memref<9x128x32xf32, #tpu.memory_space<vmem>>, %arg3: memref<8x32xf32, #tpu.memory_space<vmem>>) attributes {dimension_semantics = [#tpu.dimension_semantics<parallel>], iteration_bounds = array<i64: 1>, scalar_prefetch = 0 : i64, scratch_operands = 0 : i64, tpu.core_type = #tpu.core_type<tc>, window_params = [{transform_indices = @transform_0, window_bounds = array<i64: 8, 9>}, {pipeline_mode = #tpu.pipeline_mode<synchronous>, transform_indices = @transform_1, window_bounds = array<i64: 9, 128, 32>}, {transform_indices = @transform_2, window_bounds = array<i64: 8, 32>}]} {
    %c0 = arith.constant 0 : index
    %c0_0 = arith.constant 0 : index
    %0 = vector.load %arg1[%c0, %c0_0] : memref<8x9xi32, #tpu.memory_space<vmem>>, vector<8x9xi32>
    %1 = tpu.iota {dimensions = array<i32: 1>} : vector<8x128xi32>
    %cst = arith.constant 0.000000e+00 : f32
    %2 = vector.broadcast %cst : f32 to vector<8x32xf32>
    %3 = vector.extract_strided_slice %0 {offsets = [0, 0], sizes = [8, 1], strides = [1, 1]} : vector<8x9xi32> to vector<8x1xi32>
    %4 = vector.broadcast %3 : vector<8x1xi32> to vector<8x128xi32>
    %5 = arith.cmpi eq, %4, %1 : vector<8x128xi32>
    %6 = arith.extui %5 : vector<8x128xi1> to vector<8x128xi32>
    %7 = arith.sitofp %6 : vector<8x128xi32> to vector<8x128xf32>
    %c0_1 = arith.constant 0 : index
    %c0_2 = arith.constant 0 : index
    %c0_3 = arith.constant 0 : index
    %8 = vector.load %arg2[%c0_1, %c0_2, %c0_3] : memref<9x128x32xf32, #tpu.memory_space<vmem>>, vector<1x128x32xf32>
    %9 = vector.shape_cast %8 : vector<1x128x32xf32> to vector<128x32xf32>
    %cst_4 = arith.constant dense<0.000000e+00> : vector<8x32xf32>
    %10 = tpu.matmul %7, %9, %cst_4 {dimension_numbers = #tpu.dot_dimension_numbers<[1], [0], [0], [1], [0, 0, 1, 1], [], []>} : vector<8x128xf32>, vector<128x32xf32>, vector<8x32xf32> -> vector<8x32xf32>
    %11 = arith.addf %2, %10 : vector<8x32xf32>
    %12 = vector.extract_strided_slice %0 {offsets = [0, 1], sizes = [8, 1], strides = [1, 1]} : vector<8x9xi32> to vector<8x1xi32>
    %13 = vector.broadcast %12 : vector<8x1xi32> to vector<8x128xi32>
    %14 = arith.cmpi eq, %13, %1 : vector<8x128xi32>
    %15 = arith.extui %14 : vector<8x128xi1> to vector<8x128xi32>
    %16 = arith.sitofp %15 : vector<8x128xi32> to vector<8x128xf32>
    %c1 = arith.constant 1 : index
    %c0_5 = arith.constant 0 : index
    %c0_6 = arith.constant 0 : index
    %17 = vector.load %arg2[%c1, %c0_5, %c0_6] : memref<9x128x32xf32, #tpu.memory_space<vmem>>, vector<1x128x32xf32>
    %18 = vector.shape_cast %17 : vector<1x128x32xf32> to vector<128x32xf32>
    %cst_7 = arith.constant dense<0.000000e+00> : vector<8x32xf32>
    %19 = tpu.matmul %16, %18, %cst_7 {dimension_numbers = #tpu.dot_dimension_numbers<[1], [0], [0], [1], [0, 0, 1, 1], [], []>} : vector<8x128xf32>, vector<128x32xf32>, vector<8x32xf32> -> vector<8x32xf32>
    %20 = arith.addf %11, %19 : vector<8x32xf32>
    %21 = vector.extract_strided_slice %0 {offsets = [0, 2], sizes = [8, 1], strides = [1, 1]} : vector<8x9xi32> to vector<8x1xi32>
    %22 = vector.broadcast %21 : vector<8x1xi32> to vector<8x128xi32>
    %23 = arith.cmpi eq, %22, %1 : vector<8x128xi32>
    %24 = arith.extui %23 : vector<8x128xi1> to vector<8x128xi32>
    %25 = arith.sitofp %24 : vector<8x128xi32> to vector<8x128xf32>
    %c2 = arith.constant 2 : index
    %c0_8 = arith.constant 0 : index
    %c0_9 = arith.constant 0 : index
    %26 = vector.load %arg2[%c2, %c0_8, %c0_9] : memref<9x128x32xf32, #tpu.memory_space<vmem>>, vector<1x128x32xf32>
    %27 = vector.shape_cast %26 : vector<1x128x32xf32> to vector<128x32xf32>
    %cst_10 = arith.constant dense<0.000000e+00> : vector<8x32xf32>
    %28 = tpu.matmul %25, %27, %cst_10 {dimension_numbers = #tpu.dot_dimension_numbers<[1], [0], [0], [1], [0, 0, 1, 1], [], []>} : vector<8x128xf32>, vector<128x32xf32>, vector<8x32xf32> -> vector<8x32xf32>
    %29 = arith.addf %20, %28 : vector<8x32xf32>
    %30 = vector.extract_strided_slice %0 {offsets = [0, 3], sizes = [8, 1], strides = [1, 1]} : vector<8x9xi32> to vector<8x1xi32>
    %31 = vector.broadcast %30 : vector<8x1xi32> to vector<8x128xi32>
    %32 = arith.cmpi eq, %31, %1 : vector<8x128xi32>
    %33 = arith.extui %32 : vector<8x128xi1> to vector<8x128xi32>
    %34 = arith.sitofp %33 : vector<8x128xi32> to vector<8x128xf32>
    %c3 = arith.constant 3 : index
    %c0_11 = arith.constant 0 : index
    %c0_12 = arith.constant 0 : index
    %35 = vector.load %arg2[%c3, %c0_11, %c0_12] : memref<9x128x32xf32, #tpu.memory_space<vmem>>, vector<1x128x32xf32>
    %36 = vector.shape_cast %35 : vector<1x128x32xf32> to vector<128x32xf32>
    %cst_13 = arith.constant dense<0.000000e+00> : vector<8x32xf32>
    %37 = tpu.matmul %34, %36, %cst_13 {dimension_numbers = #tpu.dot_dimension_numbers<[1], [0], [0], [1], [0, 0, 1, 1], [], []>} : vector<8x128xf32>, vector<128x32xf32>, vector<8x32xf32> -> vector<8x32xf32>
    %38 = arith.addf %29, %37 : vector<8x32xf32>
    %39 = vector.extract_strided_slice %0 {offsets = [0, 4], sizes = [8, 1], strides = [1, 1]} : vector<8x9xi32> to vector<8x1xi32>
    %40 = vector.broadcast %39 : vector<8x1xi32> to vector<8x128xi32>
    %41 = arith.cmpi eq, %40, %1 : vector<8x128xi32>
    %42 = arith.extui %41 : vector<8x128xi1> to vector<8x128xi32>
    %43 = arith.sitofp %42 : vector<8x128xi32> to vector<8x128xf32>
    %c4 = arith.constant 4 : index
    %c0_14 = arith.constant 0 : index
    %c0_15 = arith.constant 0 : index
    %44 = vector.load %arg2[%c4, %c0_14, %c0_15] : memref<9x128x32xf32, #tpu.memory_space<vmem>>, vector<1x128x32xf32>
    %45 = vector.shape_cast %44 : vector<1x128x32xf32> to vector<128x32xf32>
    %cst_16 = arith.constant dense<0.000000e+00> : vector<8x32xf32>
    %46 = tpu.matmul %43, %45, %cst_16 {dimension_numbers = #tpu.dot_dimension_numbers<[1], [0], [0], [1], [0, 0, 1, 1], [], []>} : vector<8x128xf32>, vector<128x32xf32>, vector<8x32xf32> -> vector<8x32xf32>
    %47 = arith.addf %38, %46 : vector<8x32xf32>
    %48 = vector.extract_strided_slice %0 {offsets = [0, 5], sizes = [8, 1], strides = [1, 1]} : vector<8x9xi32> to vector<8x1xi32>
    %49 = vector.broadcast %48 : vector<8x1xi32> to vector<8x128xi32>
    %50 = arith.cmpi eq, %49, %1 : vector<8x128xi32>
    %51 = arith.extui %50 : vector<8x128xi1> to vector<8x128xi32>
    %52 = arith.sitofp %51 : vector<8x128xi32> to vector<8x128xf32>
    %c5 = arith.constant 5 : index
    %c0_17 = arith.constant 0 : index
    %c0_18 = arith.constant 0 : index
    %53 = vector.load %arg2[%c5, %c0_17, %c0_18] : memref<9x128x32xf32, #tpu.memory_space<vmem>>, vector<1x128x32xf32>
    %54 = vector.shape_cast %53 : vector<1x128x32xf32> to vector<128x32xf32>
    %cst_19 = arith.constant dense<0.000000e+00> : vector<8x32xf32>
    %55 = tpu.matmul %52, %54, %cst_19 {dimension_numbers = #tpu.dot_dimension_numbers<[1], [0], [0], [1], [0, 0, 1, 1], [], []>} : vector<8x128xf32>, vector<128x32xf32>, vector<8x32xf32> -> vector<8x32xf32>
    %56 = arith.addf %47, %55 : vector<8x32xf32>
    %57 = vector.extract_strided_slice %0 {offsets = [0, 6], sizes = [8, 1], strides = [1, 1]} : vector<8x9xi32> to vector<8x1xi32>
    %58 = vector.broadcast %57 : vector<8x1xi32> to vector<8x128xi32>
    %59 = arith.cmpi eq, %58, %1 : vector<8x128xi32>
    %60 = arith.extui %59 : vector<8x128xi1> to vector<8x128xi32>
    %61 = arith.sitofp %60 : vector<8x128xi32> to vector<8x128xf32>
    %c6 = arith.constant 6 : index
    %c0_20 = arith.constant 0 : index
    %c0_21 = arith.constant 0 : index
    %62 = vector.load %arg2[%c6, %c0_20, %c0_21] : memref<9x128x32xf32, #tpu.memory_space<vmem>>, vector<1x128x32xf32>
    %63 = vector.shape_cast %62 : vector<1x128x32xf32> to vector<128x32xf32>
    %cst_22 = arith.constant dense<0.000000e+00> : vector<8x32xf32>
    %64 = tpu.matmul %61, %63, %cst_22 {dimension_numbers = #tpu.dot_dimension_numbers<[1], [0], [0], [1], [0, 0, 1, 1], [], []>} : vector<8x128xf32>, vector<128x32xf32>, vector<8x32xf32> -> vector<8x32xf32>
    %65 = arith.addf %56, %64 : vector<8x32xf32>
    %66 = vector.extract_strided_slice %0 {offsets = [0, 7], sizes = [8, 1], strides = [1, 1]} : vector<8x9xi32> to vector<8x1xi32>
    %67 = vector.broadcast %66 : vector<8x1xi32> to vector<8x128xi32>
    %68 = arith.cmpi eq, %67, %1 : vector<8x128xi32>
    %69 = arith.extui %68 : vector<8x128xi1> to vector<8x128xi32>
    %70 = arith.sitofp %69 : vector<8x128xi32> to vector<8x128xf32>
    %c7 = arith.constant 7 : index
    %c0_23 = arith.constant 0 : index
    %c0_24 = arith.constant 0 : index
    %71 = vector.load %arg2[%c7, %c0_23, %c0_24] : memref<9x128x32xf32, #tpu.memory_space<vmem>>, vector<1x128x32xf32>
    %72 = vector.shape_cast %71 : vector<1x128x32xf32> to vector<128x32xf32>
    %cst_25 = arith.constant dense<0.000000e+00> : vector<8x32xf32>
    %73 = tpu.matmul %70, %72, %cst_25 {dimension_numbers = #tpu.dot_dimension_numbers<[1], [0], [0], [1], [0, 0, 1, 1], [], []>} : vector<8x128xf32>, vector<128x32xf32>, vector<8x32xf32> -> vector<8x32xf32>
    %74 = arith.addf %65, %73 : vector<8x32xf32>
    %75 = vector.extract_strided_slice %0 {offsets = [0, 8], sizes = [8, 1], strides = [1, 1]} : vector<8x9xi32> to vector<8x1xi32>
    %76 = vector.broadcast %75 : vector<8x1xi32> to vector<8x128xi32>
    %77 = arith.cmpi eq, %76, %1 : vector<8x128xi32>
    %78 = arith.extui %77 : vector<8x128xi1> to vector<8x128xi32>
    %79 = arith.sitofp %78 : vector<8x128xi32> to vector<8x128xf32>
    %c8 = arith.constant 8 : index
    %c0_26 = arith.constant 0 : index
    %c0_27 = arith.constant 0 : index
    %80 = vector.load %arg2[%c8, %c0_26, %c0_27] : memref<9x128x32xf32, #tpu.memory_space<vmem>>, vector<1x128x32xf32>
    %81 = vector.shape_cast %80 : vector<1x128x32xf32> to vector<128x32xf32>
    %cst_28 = arith.constant dense<0.000000e+00> : vector<8x32xf32>
    %82 = tpu.matmul %79, %81, %cst_28 {dimension_numbers = #tpu.dot_dimension_numbers<[1], [0], [0], [1], [0, 0, 1, 1], [], []>} : vector<8x128xf32>, vector<128x32xf32>, vector<8x32xf32> -> vector<8x32xf32>
    %83 = arith.addf %74, %82 : vector<8x32xf32>
    %c0_29 = arith.constant 0 : index
    %c0_30 = arith.constant 0 : index
    %84 = vector.load %arg3[%c0_29, %c0_30] : memref<8x32xf32, #tpu.memory_space<vmem>>, vector<8x32xf32>
    tpu.vector_store %arg3[%c0_29, %c0_30], %83 {strides = array<i32>} : memref<8x32xf32, #tpu.memory_space<vmem>>, vector<8x32xf32>,
    return
  }
  func.func @transform_0(%arg0: i32) -> (i32, i32) {
    %c0_i32 = arith.constant 0 : i32
    %c0_i32_0 = arith.constant 0 : i32
    return %arg0, %c0_i32 : i32, i32
  }
  func.func @transform_1(%arg0: i32) -> (i32, i32, i32) {
    %c0_i32 = arith.constant 0 : i32
    %c0_i32_0 = arith.constant 0 : i32
    %c0_i32_1 = arith.constant 0 : i32
    %c0_i32_2 = arith.constant 0 : i32
    return %c0_i32, %c0_i32_0, %c0_i32_1 : i32, i32, i32
  }
  func.func @transform_2(%arg0: i32) -> (i32, i32) {
    %c0_i32 = arith.constant 0 : i32
    %c0_i32_0 = arith.constant 0 : i32
    return %arg0, %c0_i32 : i32, i32
  }
}

</mosaic_0001>

<bundles_post_ra>
// kernel: atom_encoder_forward.1
= control target key start
LH: loop header
LB: loop body
LE: loop exit
PB: predicated region body
PF: predicated region fallthrough
CT: control target
= control target key end

     0   :  { %v1766_v2 = vmov 4   ;;  %v1767_v3 = vmov 5   ;;  %v1768_v10 = vmov 0.0|0.0   ;;  %vm1769_vm0 = vmmov 0   ;;  %s2363_s0 = inlined_call_operand.vmem [shape: s32[8,9], index: 0, kind: input, shape index: {}]   ;;  %s2364_s1 = inlined_call_operand.vmem [shape: f32[9,128,32], index: 1, kind: input, shape index: {}]   ;;  %s2365_s2 = inlined_call_operand.hbm [shape: f32[8,32], index: 2, kind: output, shape index: {}]  }
   0x1   :  { %v1798_v0 = vld [vmem:[%s2363_s0] sm:$0xff]  ;;  %1733 = vset.pattern.permute.xlu0 %v1766_v2  ;;  %1735 = vset.pattern.permute.xlu1 %v1767_v3  ;;  %v932_v4 = vld [vmem:[%s2364_s1 + $0x208] sm:$0xff]  ;;  %v933_v5 = vld [vmem:[%s2364_s1 + $0x210] sm:$0xff]  ;;  %v1770_v15 = vmov 0.0   ;;  %v1771_v18 = vmov 1   ;;  %v1772_v19 = vmov 0  }
   0x2   :  { %v931_v1 = vld [vmem:[%s2364_s1 + $0x200] sm:$0xff]  ;;  %389 = vperm.xlu0 %1733, %v1798_v0   ;;  %483 = vperm.xlu1 %1735, %v1798_v0   ;;  %v934_v7 = vld [vmem:[%s2364_s1 + $0x218] sm:$0xff]  ;;  %v877_v9 = vld [vmem:[%s2364_s1 + $0x88] sm:$0xff]  ;;  %v1773_v27 = vmov 6   ;;  %v1774_v28 = vmov 2   ;;  %v1775_v35 = vmov 7  }
   0x3   :  { %v1585_v6 = vpack.c.bf16 %v932_v4, %v931_v1  ;;  %v876_v8 = vld [vmem:[%s2364_s1 + $0x80] sm:$0xff]  ;;  %1584 = vmatprep.subr.bf16.mxu0 %v1768_v10  ;;  %1488 = vmatprep.subr.bf16.mxu1 %v1768_v10  ;;  %v878_v12 = vld [vmem:[%s2364_s1 + $0x90] sm:$0xff]  ;;  %v1588_v13 = vpack.c.bf16 %v934_v7, %v933_v5  ;;  %v879_v14 = vld [vmem:[%s2364_s1 + $0x98] sm:$0xff]  ;;  %v1776_v38 = vmov 8  }
   0x4   :  { %v1489_v11 = vpack.c.bf16 %v877_v9, %v876_v8  ;;  %1345 = vmatprep.mubr.msk.f32.mxu0 %vm1769_vm0, %v1770_v15  ;;  %v935_v16 = vld [vmem:[%s2364_s1 + $0x220] sm:$0xff]  ;;  %v1492_v17 = vpack.c.bf16 %v879_v14, %v878_v12  ;;  %v936_v20 = vld [vmem:[%s2364_s1 + $0x228] sm:$0xff]  ;;  %v937_v25 = vld [vmem:[%s2364_s1 + $0x230] sm:$0xff]  ;;  %1205 = vmatprep.mubr.msk.f32.mxu1 %vm1769_vm0, %v1770_v15 }
   0x5   :  { %1586 = vmatpush3.bf16.msra.mxu0 %v1585_v6  ;;  %v880_v21 = vld [vmem:[%s2364_s1 + $0xa0] sm:$0xff]  ;;  %v881_v22 = vld [vmem:[%s2364_s1 + $0xa8] sm:$0xff]  ;;  %v1591_v23 = vpack.c.bf16 %v936_v20, %v935_v16  ;;  %v938_v26 = vld [vmem:[%s2364_s1 + $0x238] sm:$0xff] }
   0x6   :  { %1587 = vmatprep.subr.bf16.mxu0 %v1768_v10  ;;  %1490 = vmatpush3.bf16.msra.mxu1 %v1489_v11  ;;  %v1495_v24 = vpack.c.bf16 %v881_v22, %v880_v21  ;;  %v882_v29 = vld [vmem:[%s2364_s1 + $0xb0] sm:$0xff]  ;;  %v883_v30 = vld [vmem:[%s2364_s1 + $0xb8] sm:$0xff]  ;;  %v1594_v31 = vpack.c.bf16 %v938_v26, %v937_v25  ;;  %v939_v32 = vld [vmem:[%s2364_s1 + $0x240] sm:$0xff] }
   0x7   :  { %1734 = vset.pattern.permute.xlu0 %v1771_v18  ;;  %1736 = vset.pattern.permute.xlu1 %v1772_v19  ;;  %v940_v33 = vld [vmem:[%s2364_s1 + $0x248] sm:$0xff]  ;;  %v1498_v34 = vpack.c.bf16 %v883_v30, %v882_v29  ;;  %v884_v36 = vld [vmem:[%s2364_s1 + $0xc0] sm:$0xff] }
   0x8   :  { %38 = vperm.xlu0 %1734, %v1798_v0   ;;  %16 = vperm.xlu1 %1736, %v1798_v0   ;;  %v885_v37 = vld [vmem:[%s2364_s1 + $0xc8] sm:$0xff] }
   0x9   :  { %1589 = vmatpush3.bf16.msra.mxu0 %v1588_v13  ;;  %1491 = vmatprep.subr.bf16.mxu1 %v1768_v10 }
   0xa   :  { %1590 = vmatprep.subr.bf16.mxu0 %v1768_v10  ;;  %1493 = vmatpush3.bf16.msra.mxu1 %v1492_v17 }
   0xb   :  { %1494 = vmatprep.subr.bf16.mxu1 %v1768_v10 }
   0xc   :  { %1737 = vset.pattern.permute.xlu1 %v1773_v27  ;;  %1738 = vset.pattern.permute.xlu0 %v1774_v28 }
   0xd   :  { %577 = vperm.xlu1 %1737, %v1798_v0   ;;  %201 = vperm.xlu0 %1738, %v1798_v0  }
   0xe   :  { %1592 = vmatpush3.bf16.msra.mxu0 %v1591_v23  ;;  %1496 = vmatpush3.bf16.msra.mxu1 %v1495_v24 }
   0xf   :  { %1593 = vmatprep.subr.bf16.mxu0 %v1768_v10  ;;  %1497 = vmatprep.subr.bf16.mxu1 %v1768_v10 }
  0x11   :  { %1739 = vset.pattern.permute.xlu1 %v1775_v35  ;;  %1741 = vset.pattern.permute.xlu0 %v1776_v38 }
  0x12   :  { %7 = vsyncpa [#allocation3], 0  ;;  %671 = vperm.xlu1 %1739, %v1798_v0   ;;  %1595 = vmatpush3.bf16.msra.mxu0 %v1594_v31  ;;  %v1597_v39 = vpack.c.bf16 %v940_v33, %v939_v32  ;;  %v941_v40 = vld [vmem:[%s2364_s1 + $0x250] sm:$0xff]  ;;  %v942_v41 = vld [vmem:[%s2364_s1 + $0x258] sm:$0xff]  ;;  %v1501_v42 = vpack.c.bf16 %v885_v37, %v884_v36  ;;  %v1777_v45 = vmov 3   ;;  %v13_v60 = vlaneseq  ;;  %s1779_s9 = smov [#allocation2]  }
  0x13   :  { %1596 = vmatprep.subr.bf16.mxu0 %v1768_v10  ;;  %1499 = vmatpush3.bf16.msra.mxu1 %v1498_v34  ;;  %v886_v43 = vld [vmem:[%s2364_s1 + $0xd0] sm:$0xff]  ;;  %v887_v44 = vld [vmem:[%s2364_s1 + $0xd8] sm:$0xff]  ;;  %v1600_v46 = vpack.c.bf16 %v942_v41, %v941_v40  ;;  %v943_v47 = vld [vmem:[%s2364_s1 + $0x260] sm:$0xff]  ;;  %v1778_v6 = vmov 1.0   ;;  %s866_s10 = sshll.u32 %s1779_s9, 4  ;;  %vm858_vm10 = vcmask 261120   ;;  %s867_s10 = int_to_ptr.vmem [resolvable:$true] %s866_s10 }
  0x14   :  { %1500 = vmatprep.subr.bf16.mxu1 %v1768_v10  ;;  %765 = vperm.xlu0 %1741, %v1798_v0   ;;  %v944_v48 = vld [vmem:[%s2364_s1 + $0x268] sm:$0xff]  ;;  %v1504_v49 = vpack.c.bf16 %v887_v44, %v886_v43  ;;  %v888_v50 = vld [vmem:[%s2364_s1 + $0xe0] sm:$0xff]  ;;  %v945_v53 = vld [vmem:[%s2364_s1 + $0x270] sm:$0xff]  ;;  %v1933_v63 = vand.u32 127, %v13_v60  ;;  %p1747_p1 = scmp.lt.s32.totalorder %s867_s10, %s867_s10 }
  0x15   :  { %v889_v51 = vld [vmem:[%s2364_s1 + $0xe8] sm:$0xff]  ;;  %v1603_v52 = vpack.c.bf16 %v944_v48, %v943_v47  ;;  %v946_v54 = vld [vmem:[%s2364_s1 + $0x278] sm:$0xff]  ;;  %v890_v56 = vld [vmem:[%s2364_s1 + $0xf0] sm:$0xff] }
  0x16   :  { %1740 = vset.pattern.permute.xlu1 %v1777_v45  ;;  %1598 = vmatpush3.bf16.msra.mxu0 %v1597_v39  ;;  %v1507_v55 = vpack.c.bf16 %v889_v51, %v888_v50  ;;  %v891_v57 = vld [vmem:[%s2364_s1 + $0xf8] sm:$0xff]  ;;  %v1606_v58 = vpack.c.bf16 %v946_v54, %v945_v53  ;;  %v949_v61 = vld [vmem:[%s2364_s1 + $0x280] sm:$0xff]  ;;  %v950_v62 = vld [vmem:[%s2364_s1 + $0x288] sm:$0xff] }
  0x17   :  { %295 = vperm.xlu1 %1740, %v1798_v0   ;;  %1599 = vmatprep.subr.bf16.mxu0 %v1768_v10  ;;  %v1510_v59 = vpack.c.bf16 %v891_v57, %v890_v56  ;;  %v1609_v0 = vpack.c.bf16 %v950_v62, %v949_v61  ;;  %v951_v2 = vld [vmem:[%s2364_s1 + $0x290] sm:$0xff]  ;;  %v952_v3 = vld [vmem:[%s2364_s1 + $0x298] sm:$0xff]  ;;  %v21_v4 = vld [vmem:[%s2364_s1] sm:$0xff] }
  0x18   :  { %1502 = vmatpush3.bf16.msra.mxu1 %v1501_v42  ;;  %v22_v5 = vld [vmem:[%s2364_s1 + $0x8] sm:$0xff]  ;;  %v1612_v7 = vpack.c.bf16 %v952_v3, %v951_v2  ;;  %v953_v9 = vld [vmem:[%s2364_s1 + $0x2a0] sm:$0xff]  ;;  %v23_v13 = vld [vmem:[%s2364_s1 + $0x10] sm:$0xff] }
  0x19   :  { %1503 = vmatprep.subr.bf16.mxu1 %v1768_v10  ;;  %v1513_v8 = vpack.c.bf16 %v22_v5, %v21_v4  ;;  %v954_v11 = vld [vmem:[%s2364_s1 + $0x2a8] sm:$0xff]  ;;  %v24_v14 = vld [vmem:[%s2364_s1 + $0x18] sm:$0xff]  ;;  %v955_v18 = vld [vmem:[%s2364_s1 + $0x2b0] sm:$0xff] }
  0x1a   :  { %1601 = vmatpush3.bf16.msra.mxu0 %v1600_v46  ;;  %v1615_v16 = vpack.c.bf16 %v954_v11, %v953_v9  ;;  %v1516_v17 = vpack.c.bf16 %v24_v14, %v23_v13  ;;  %v956_v19 = vld [vmem:[%s2364_s1 + $0x2b8] sm:$0xff]  ;;  %v25_v20 = vld [vmem:[%s2364_s1 + $0x20] sm:$0xff]  ;;  %v26_v21 = vld [vmem:[%s2364_s1 + $0x28] sm:$0xff] }
  0x1b   :  { %1602 = vmatprep.subr.bf16.mxu0 %v1768_v10  ;;  %v1618_v22 = vpack.c.bf16 %v956_v19, %v955_v18  ;;  %v1519_v23 = vpack.c.bf16 %v26_v21, %v25_v20  ;;  %v957_v24 = vld [vmem:[%s2364_s1 + $0x2c0] sm:$0xff]  ;;  %v958_v25 = vld [vmem:[%s2364_s1 + $0x2c8] sm:$0xff]  ;;  %v27_v26 = vld [vmem:[%s2364_s1 + $0x30] sm:$0xff] }
  0x1c   :  { %1505 = vmatpush3.bf16.msra.mxu1 %v1504_v49  ;;  %v28_v27 = vld [vmem:[%s2364_s1 + $0x38] sm:$0xff]  ;;  %v1621_v28 = vpack.c.bf16 %v958_v25, %v957_v24  ;;  %v959_v30 = vld [vmem:[%s2364_s1 + $0x2d0] sm:$0xff]  ;;  %v29_v32 = vld [vmem:[%s2364_s1 + $0x40] sm:$0xff] }
  0x1d   :  { %1506 = vmatprep.subr.bf16.mxu1 %v1768_v10  ;;  %v1522_v29 = vpack.c.bf16 %v28_v27, %v27_v26  ;;  %v960_v31 = vld [vmem:[%s2364_s1 + $0x2d8] sm:$0xff]  ;;  %v30_v33 = vld [vmem:[%s2364_s1 + $0x48] sm:$0xff]  ;;  %v961_v36 = vld [vmem:[%s2364_s1 + $0x2e0] sm:$0xff] }
  0x1e   :  { %1604 = vmatpush3.bf16.msra.mxu0 %v1603_v52  ;;  %v1624_v34 = vpack.c.bf16 %v960_v31, %v959_v30  ;;  %v1525_v35 = vpack.c.bf16 %v30_v33, %v29_v32  ;;  %v962_v37 = vld [vmem:[%s2364_s1 + $0x2e8] sm:$0xff]  ;;  %v31_v38 = vld [vmem:[%s2364_s1 + $0x50] sm:$0xff]  ;;  %v32_v39 = vld [vmem:[%s2364_s1 + $0x58] sm:$0xff] }
  0x1f   :  { %1605 = vmatprep.subr.bf16.mxu0 %v1768_v10  ;;  %v1627_v40 = vpack.c.bf16 %v962_v37, %v961_v36  ;;  %v1528_v41 = vpack.c.bf16 %v32_v39, %v31_v38  ;;  %v963_v42 = vld [vmem:[%s2364_s1 + $0x2f0] sm:$0xff]  ;;  %v964_v43 = vld [vmem:[%s2364_s1 + $0x2f8] sm:$0xff]  ;;  %v33_v44 = vld [vmem:[%s2364_s1 + $0x60] sm:$0xff] }
  0x20   :  { %1508 = vmatpush3.bf16.msra.mxu1 %v1507_v55  ;;  %v34_v45 = vld [vmem:[%s2364_s1 + $0x68] sm:$0xff]  ;;  %v1630_v46 = vpack.c.bf16 %v964_v43, %v963_v42  ;;  %v967_v49 = vld [vmem:[%s2364_s1 + $0x300] sm:$0xff]  ;;  %v35_v51 = vld [vmem:[%s2364_s1 + $0x70] sm:$0xff] }
  0x21   :  { %1509 = vmatprep.subr.bf16.mxu1 %v1768_v10  ;;  %v1531_v48 = vpack.c.bf16 %v34_v45, %v33_v44  ;;  %v968_v50 = vld [vmem:[%s2364_s1 + $0x308] sm:$0xff]  ;;  %v36_v52 = vld [vmem:[%s2364_s1 + $0x78] sm:$0xff]  ;;  %v969_v55 = vld [vmem:[%s2364_s1 + $0x310] sm:$0xff] }
  0x22   :  { %1607 = vmatpush3.bf16.msra.mxu0 %v1606_v58  ;;  %v1633_v53 = vpack.c.bf16 %v968_v50, %v967_v49  ;;  %v1534_v54 = vpack.c.bf16 %v36_v52, %v35_v51  ;;  %v970_v56 = vld [vmem:[%s2364_s1 + $0x318] sm:$0xff]  ;;  %v895_v58 = vld [vmem:[%s2364_s1 + $0x100] sm:$0xff]  ;;  %v973_v5 = vld [vmem:[%s2364_s1 + $0x330] sm:$0xff] }
  0x23   :  { %1608 = vmatprep.subr.bf16.mxu0 %v1768_v10  ;;  %v1636_v60 = vpack.c.bf16 %v970_v56, %v969_v55  ;;  %v971_v62 = vld [vmem:[%s2364_s1 + $0x320] sm:$0xff]  ;;  %v898_v2 = vld [vmem:[%s2364_s1 + $0x118] sm:$0xff]  ;;  %v900_v9 = vld [vmem:[%s2364_s1 + $0x128] sm:$0xff] }
  0x24   :  { %1511 = vmatpush3.bf16.msra.mxu1 %v1510_v59  ;;  %v896_v59 = vld [vmem:[%s2364_s1 + $0x108] sm:$0xff]  ;;  %v975_v13 = vld [vmem:[%s2364_s1 + $0x340] sm:$0xff]  ;;  %v977_v20 = vld [vmem:[%s2364_s1 + $0x350] sm:$0xff] }
  0x25   :  { %1512 = vmatprep.subr.bf16.mxu1 %v1768_v10  ;;  %v1537_v61 = vpack.c.bf16 %v896_v59, %v895_v58  ;;  %v976_v14 = vld [vmem:[%s2364_s1 + $0x348] sm:$0xff]  ;;  %v978_v21 = vld [vmem:[%s2364_s1 + $0x358] sm:$0xff]  ;;  %v979_v26 = vld [vmem:[%s2364_s1 + $0x360] sm:$0xff] }
  0x26   :  { %v1645_v18 = vpack.c.bf16 %v976_v14, %v975_v13  ;;  %v1648_v24 = vpack.c.bf16 %v978_v21, %v977_v20  ;;  %v980_v27 = vld [vmem:[%s2364_s1 + $0x368] sm:$0xff]  ;;  %v981_v32 = vld [vmem:[%s2364_s1 + $0x370] sm:$0xff]  ;;  %v982_v33 = vld [vmem:[%s2364_s1 + $0x378] sm:$0xff] }
  0x27   :  { %v1651_v30 = vpack.c.bf16 %v980_v27, %v979_v26  ;;  %v1654_v36 = vpack.c.bf16 %v982_v33, %v981_v32  ;;  %v985_v39 = vld [vmem:[%s2364_s1 + $0x380] sm:$0xff]  ;;  %v910_v42 = vld [vmem:[%s2364_s1 + $0x178] sm:$0xff]  ;;  %v987_v45 = vld [vmem:[%s2364_s1 + $0x390] sm:$0xff] }
  0x28   :  { %v914_v49 = vld [vmem:[%s2364_s1 + $0x188] sm:$0xff]  ;;  %v989_v52 = vld [vmem:[%s2364_s1 + $0x3a0] sm:$0xff]  ;;  %v916_v55 = vld [vmem:[%s2364_s1 + $0x198] sm:$0xff] }
  0x29   :  { %v991_v58 = vld [vmem:[%s2364_s1 + $0x3b0] sm:$0xff]  ;;  %v992_v59 = vld [vmem:[%s2364_s1 + $0x3b8] sm:$0xff] }
  0x2a   :  { %v928_v32 = vld [vmem:[%s2364_s1 + $0x1f8] sm:$0xff] }
  0x81   :  { %v390_v1 = vpop.permute.xlu0 %389  ;;  %v484_v47 = vpop.permute.xlu1 %483 }
  0x82   :  { %vm391_vm1 = vcmp.eq.s32.totalorder %v390_v1, %v1933_v63  ;;  %vm485_vm3 = vcmp.eq.s32.totalorder %v484_v47, %v1933_v63  ;;  %v897_v1 = vld [vmem:[%s2364_s1 + $0x110] sm:$0xff] }
  0x83   :  { %1346 = vmatmul.mubr.msk.f32.vlgmr.msra.gmra.mrb[0].mxu0 %vm391_vm1, %v1778_v6  ;;  %v1540_v4 = vpack.c.bf16 %v898_v2, %v897_v1  ;;  %v993_v1 = vld [vmem:[%s2364_s1 + $0x3c0] sm:$0xff]  ;;  %v994_v2 = vld [vmem:[%s2364_s1 + $0x3c8] sm:$0xff] }
  0x84   :  { %1610 = vmatpush3.bf16.msra.mxu0 %v1609_v0  ;;  %1380 = vmatprep.mubr.msk.f32.mxu0 %vm1769_vm0, %v1770_v15  ;;  %v972_v0 = vld [vmem:[%s2364_s1 + $0x328] sm:$0xff] }
  0x85   :  { %1611 = vmatprep.subr.bf16.mxu0 %v1768_v10  ;;  %v1639_v3 = vpack.c.bf16 %v972_v0, %v971_v62  ;;  %v1666_v62 = vpack.c.bf16 %v992_v59, %v991_v58 }
  0x87   :  { %v39_v12 = vpop.permute.xlu0 %38  ;;  %v17_v57 = vpop.permute.xlu1 %16 }
  0x88   :  { %vm40_vm2 = vcmp.eq.s32.totalorder %v39_v12, %v1933_v63  ;;  %1613 = vmatpush3.bf16.msra.mxu0 %v1612_v7  ;;  %vm18_vm4 = vcmp.eq.s32.totalorder %v17_v57, %v1933_v63  ;;  %v974_v7 = vld [vmem:[%s2364_s1 + $0x338] sm:$0xff] }
  0x89   :  { %1206 = vmatmul.mubr.msk.f32.vlgmr.msra.gmra.mrb[0].mxu1 %vm40_vm2, %v1778_v6  ;;  %1614 = vmatprep.subr.bf16.mxu0 %v1768_v10  ;;  %v1642_v11 = vpack.c.bf16 %v974_v7, %v973_v5  ;;  %v1669_v5 = vpack.c.bf16 %v994_v2, %v993_v1 }
  0x8a   :  { %1514 = vmatpush3.bf16.msra.mxu1 %v1513_v8  ;;  %1240 = vmatprep.mubr.msk.f32.mxu1 %vm1769_vm0, %v1770_v15  ;;  %v899_v8 = vld [vmem:[%s2364_s1 + $0x120] sm:$0xff] }
  0x8b   :  { %1515 = vmatprep.subr.bf16.mxu1 %v1768_v10  ;;  %v1543_v12 = vpack.c.bf16 %v900_v9, %v899_v8  ;;  %v995_v8 = vld [vmem:[%s2364_s1 + $0x3d0] sm:$0xff]  ;;  %v996_v9 = vld [vmem:[%s2364_s1 + $0x3d8] sm:$0xff] }
  0x8c   :  { %1616 = vmatpush3.bf16.msra.mxu0 %v1615_v16  ;;  %v901_v16 = vld [vmem:[%s2364_s1 + $0x130] sm:$0xff]  ;;  %v578_v38 = vpop.permute.xlu1 %577  ;;  %v202_v47 = vpop.permute.xlu0 %201  ;;  %v1672_v13 = vpack.c.bf16 %v996_v9, %v995_v8 }
  0x8d   :  { %1617 = vmatprep.subr.bf16.mxu0 %v1768_v10  ;;  %vm579_vm5 = vcmp.eq.s32.totalorder %v578_v38, %v1933_v63  ;;  %vm203_vm6 = vcmp.eq.s32.totalorder %v202_v47, %v1933_v63  ;;  %v1013_v47 = vld [vmem:[%s2364_s1 + $0x450] sm:$0xff] }
  0x8e   :  { %1517 = vmatpush3.bf16.msra.mxu1 %v1516_v17  ;;  %v902_v17 = vld [vmem:[%s2364_s1 + $0x138] sm:$0xff] }
  0x8f   :  { %1518 = vmatprep.subr.bf16.mxu1 %v1768_v10  ;;  %v1546_v19 = vpack.c.bf16 %v902_v17, %v901_v16  ;;  %v997_v16 = vld [vmem:[%s2364_s1 + $0x3e0] sm:$0xff]  ;;  %v998_v17 = vld [vmem:[%s2364_s1 + $0x3e8] sm:$0xff] }
  0x90   :  { %1619 = vmatpush3.bf16.msra.mxu0 %v1618_v22  ;;  %v903_v22 = vld [vmem:[%s2364_s1 + $0x140] sm:$0xff]  ;;  %v1675_v20 = vpack.c.bf16 %v998_v17, %v997_v16 }
  0x91   :  { %1620 = vmatprep.subr.bf16.mxu0 %v1768_v10  ;;  %v672_v27 = vpop.permute.xlu1 %671 }
  0x92   :  { %1520 = vmatpush3.bf16.msra.mxu1 %v1519_v23  ;;  %v904_v23 = vld [vmem:[%s2364_s1 + $0x148] sm:$0xff]  ;;  %vm673_vm7 = vcmp.eq.s32.totalorder %v672_v27, %v1933_v63 }
  0x93   :  { %1521 = vmatprep.subr.bf16.mxu1 %v1768_v10  ;;  %v1549_v25 = vpack.c.bf16 %v904_v23, %v903_v22  ;;  %v999_v22 = vld [vmem:[%s2364_s1 + $0x3f0] sm:$0xff]  ;;  %v1000_v23 = vld [vmem:[%s2364_s1 + $0x3f8] sm:$0xff] }
  0x94   :  { %1622 = vmatpush3.bf16.msra.mxu0 %v1621_v28  ;;  %v905_v28 = vld [vmem:[%s2364_s1 + $0x150] sm:$0xff]  ;;  %v1678_v26 = vpack.c.bf16 %v1000_v23, %v999_v22 }
  0x95   :  { %1623 = vmatprep.subr.bf16.mxu0 %v1768_v10 }
  0x96   :  { %1523 = vmatpush3.bf16.msra.mxu1 %v1522_v29  ;;  %v906_v29 = vld [vmem:[%s2364_s1 + $0x158] sm:$0xff] }
  0x97   :  { %1524 = vmatprep.subr.bf16.mxu1 %v1768_v10  ;;  %v1552_v31 = vpack.c.bf16 %v906_v29, %v905_v28  ;;  %v1003_v29 = vld [vmem:[%s2364_s1 + $0x400] sm:$0xff] }
  0x98   :  { %1625 = vmatpush3.bf16.msra.mxu0 %v1624_v34  ;;  %v907_v34 = vld [vmem:[%s2364_s1 + $0x160] sm:$0xff] }
  0x99   :  { %1626 = vmatprep.subr.bf16.mxu0 %v1768_v10 }
  0x9a   :  { %1526 = vmatpush3.bf16.msra.mxu1 %v1525_v35  ;;  %v908_v35 = vld [vmem:[%s2364_s1 + $0x168] sm:$0xff] }
  0x9b   :  { %1527 = vmatprep.subr.bf16.mxu1 %v1768_v10  ;;  %v1555_v37 = vpack.c.bf16 %v908_v35, %v907_v34  ;;  %v1005_v35 = vld [vmem:[%s2364_s1 + $0x410] sm:$0xff] }
  0x9c   :  { %1628 = vmatpush3.bf16.msra.mxu0 %v1627_v40  ;;  %v986_v40 = vld [vmem:[%s2364_s1 + $0x388] sm:$0xff] }
  0x9d   :  { %1629 = vmatprep.subr.bf16.mxu0 %v1768_v10  ;;  %v1657_v43 = vpack.c.bf16 %v986_v40, %v985_v39  ;;  %v1007_v39 = vld [vmem:[%s2364_s1 + $0x420] sm:$0xff]  ;;  %v1008_v40 = vld [vmem:[%s2364_s1 + $0x428] sm:$0xff] }
  0x9e   :  { %1529 = vmatpush3.bf16.msra.mxu1 %v1528_v41  ;;  %v909_v41 = vld [vmem:[%s2364_s1 + $0x170] sm:$0xff] }
  0x9f   :  { %1530 = vmatprep.subr.bf16.mxu1 %v1768_v10  ;;  %v1558_v44 = vpack.c.bf16 %v910_v42, %v909_v41  ;;  %v1687_v41 = vpack.c.bf16 %v1008_v40, %v1007_v39  ;;  %v1010_v42 = vld [vmem:[%s2364_s1 + $0x438] sm:$0xff] }
  0xa0   :  { %1631 = vmatpush3.bf16.msra.mxu0 %v1630_v46  ;;  %v988_v46 = vld [vmem:[%s2364_s1 + $0x398] sm:$0xff] }
  0xa1   :  { %1632 = vmatprep.subr.bf16.mxu0 %v1768_v10  ;;  %v1660_v50 = vpack.c.bf16 %v988_v46, %v987_v45  ;;  %v1012_v45 = vld [vmem:[%s2364_s1 + $0x448] sm:$0xff] }
  0xa2   :  { %1532 = vmatpush3.bf16.msra.mxu1 %v1531_v48  ;;  %v913_v48 = vld [vmem:[%s2364_s1 + $0x180] sm:$0xff] }
  0xa3   :  { %1533 = vmatprep.subr.bf16.mxu1 %v1768_v10  ;;  %1381 = vmatmul.mubr.msk.f32.vlgmr.msra.gmra.mrb[0].mxu0 %vm485_vm3, %v1778_v6  ;;  %v1561_v51 = vpack.c.bf16 %v914_v49, %v913_v48  ;;  %v1014_v48 = vld [vmem:[%s2364_s1 + $0x458] sm:$0xff] }
  0xa4   :  { %1634 = vmatpush3.bf16.msra.mxu0 %v1633_v53  ;;  %1415 = vmatprep.mubr.msk.f32.mxu0 %vm1769_vm0, %v1770_v15  ;;  %v990_v53 = vld [vmem:[%s2364_s1 + $0x3a8] sm:$0xff]  ;;  %v1696_v49 = vpack.c.bf16 %v1014_v48, %v1013_v47 }
  0xa5   :  { %1635 = vmatprep.subr.bf16.mxu0 %v1768_v10  ;;  %v1663_v56 = vpack.c.bf16 %v990_v53, %v989_v52  ;;  %v1017_v53 = vld [vmem:[%s2364_s1 + $0x470] sm:$0xff] }
  0xa6   :  { %1535 = vmatpush3.bf16.msra.mxu1 %v1534_v54  ;;  %v915_v54 = vld [vmem:[%s2364_s1 + $0x190] sm:$0xff] }
  0xa7   :  { %1536 = vmatprep.subr.bf16.mxu1 %v1768_v10  ;;  %v1564_v57 = vpack.c.bf16 %v916_v55, %v915_v54  ;;  %v1018_v54 = vld [vmem:[%s2364_s1 + $0x478] sm:$0xff] }
  0xa8   :  { %1637 = vmatpush3.bf16.msra.mxu0 %v1636_v60  ;;  %v917_v60 = vld [vmem:[%s2364_s1 + $0x1a0] sm:$0xff]  ;;  %v1702_v55 = vpack.c.bf16 %v1018_v54, %v1017_v53 }
  0xa9   :  { %1241 = vmatmul.mubr.msk.f32.vlgmr.msra.gmra.mrb[0].mxu1 %vm18_vm4, %v1778_v6  ;;  %1638 = vmatprep.subr.bf16.mxu0 %v1768_v10 }
  0xaa   :  { %1538 = vmatpush3.bf16.msra.mxu1 %v1537_v61  ;;  %1275 = vmatprep.mubr.msk.f32.mxu1 %vm1769_vm0, %v1770_v15  ;;  %v918_v61 = vld [vmem:[%s2364_s1 + $0x1a8] sm:$0xff] }
  0xab   :  { %1539 = vmatprep.subr.bf16.mxu1 %v1768_v10  ;;  %v1567_v0 = vpack.c.bf16 %v918_v61, %v917_v60 }
  0xac   :  { %1640 = vmatpush3.bf16.msra.mxu0 %v1639_v3  ;;  %v919_v3 = vld [vmem:[%s2364_s1 + $0x1b0] sm:$0xff] }
  0xad   :  { %1641 = vmatprep.subr.bf16.mxu0 %v1768_v10 }
  0xae   :  { %1541 = vmatpush3.bf16.msra.mxu1 %v1540_v4  ;;  %v920_v4 = vld [vmem:[%s2364_s1 + $0x1b8] sm:$0xff] }
  0xaf   :  { %1542 = vmatprep.subr.bf16.mxu1 %v1768_v10  ;;  %v1570_v7 = vpack.c.bf16 %v920_v4, %v919_v3 }
  0xb0   :  { %1643 = vmatpush3.bf16.msra.mxu0 %v1642_v11  ;;  %v921_v11 = vld [vmem:[%s2364_s1 + $0x1c0] sm:$0xff] }
  0xb1   :  { %1644 = vmatprep.subr.bf16.mxu0 %v1768_v10 }
  0xb2   :  { %1544 = vmatpush3.bf16.msra.mxu1 %v1543_v12  ;;  %v922_v12 = vld [vmem:[%s2364_s1 + $0x1c8] sm:$0xff] }
  0xb3   :  { %1545 = vmatprep.subr.bf16.mxu1 %v1768_v10  ;;  %v1573_v14 = vpack.c.bf16 %v922_v12, %v921_v11 }
  0xb4   :  { %1646 = vmatpush3.bf16.msra.mxu0 %v1645_v18  ;;  %v923_v18 = vld [vmem:[%s2364_s1 + $0x1d0] sm:$0xff] }
  0xb5   :  { %1647 = vmatprep.subr.bf16.mxu0 %v1768_v10 }
  0xb6   :  { %1547 = vmatpush3.bf16.msra.mxu1 %v1546_v19  ;;  %v924_v19 = vld [vmem:[%s2364_s1 + $0x1d8] sm:$0xff] }
  0xb7   :  { %1548 = vmatprep.subr.bf16.mxu1 %v1768_v10  ;;  %v1576_v21 = vpack.c.bf16 %v924_v19, %v923_v18 }
  0xb8   :  { %1649 = vmatpush3.bf16.msra.mxu0 %v1648_v24  ;;  %v925_v24 = vld [vmem:[%s2364_s1 + $0x1e0] sm:$0xff] }
  0xb9   :  { %1650 = vmatprep.subr.bf16.mxu0 %v1768_v10 }
  0xba   :  { %1550 = vmatpush3.bf16.msra.mxu1 %v1549_v25  ;;  %v926_v25 = vld [vmem:[%s2364_s1 + $0x1e8] sm:$0xff] }
  0xbb   :  { %1551 = vmatprep.subr.bf16.mxu1 %v1768_v10  ;;  %v1579_v28 = vpack.c.bf16 %v926_v25, %v925_v24 }
  0xbc   :  { %1652 = vmatpush3.bf16.msra.mxu0 %v1651_v30  ;;  %v1004_v30 = vld [vmem:[%s2364_s1 + $0x408] sm:$0xff] }
  0xbd   :  { %1653 = vmatprep.subr.bf16.mxu0 %v1768_v10  ;;  %v1681_v33 = vpack.c.bf16 %v1004_v30, %v1003_v29 }
  0xbe   :  { %1553 = vmatpush3.bf16.msra.mxu1 %v1552_v31  ;;  %v927_v31 = vld [vmem:[%s2364_s1 + $0x1f0] sm:$0xff] }
  0xbf   :  { %1554 = vmatprep.subr.bf16.mxu1 %v1768_v10  ;;  %v1582_v34 = vpack.c.bf16 %v928_v32, %v927_v31 }
  0xc0   :  { %1655 = vmatpush3.bf16.msra.mxu0 %v1654_v36  ;;  %v1006_v36 = vld [vmem:[%s2364_s1 + $0x418] sm:$0xff] }
  0xc1   :  { %1656 = vmatprep.subr.bf16.mxu0 %v1768_v10  ;;  %v1684_v38 = vpack.c.bf16 %v1006_v36, %v1005_v35 }
  0xc2   :  { %1556 = vmatpush3.bf16.msra.mxu1 %v1555_v37  ;;  %v296_v37 = vpop.permute.xlu1 %295 }
  0xc3   :  { %1557 = vmatprep.subr.bf16.mxu1 %v1768_v10  ;;  %1416 = vmatmul.mubr.msk.f32.vlgmr.msra.gmra.mrb[0].mxu0 %vm579_vm5, %v1778_v6  ;;  %vm297_vm8 = vcmp.eq.s32.totalorder %v296_v37, %v1933_v63 }
  0xc4   :  { %1658 = vmatpush3.bf16.msra.mxu0 %v1657_v43  ;;  %1450 = vmatprep.mubr.msk.f32.mxu0 %vm1769_vm0, %v1770_v15 }
  0xc5   :  { %1659 = vmatprep.subr.bf16.mxu0 %v1768_v10 }
  0xc6   :  { %1559 = vmatpush3.bf16.msra.mxu1 %v1558_v44  ;;  %v1011_v44 = vld [vmem:[%s2364_s1 + $0x440] sm:$0xff] }
  0xc7   :  { %1560 = vmatprep.subr.bf16.mxu1 %v1768_v10  ;;  %v1693_v46 = vpack.c.bf16 %v1012_v45, %v1011_v44 }
  0xc8   :  { %1661 = vmatpush3.bf16.msra.mxu0 %v1660_v50  ;;  %v1015_v50 = vld [vmem:[%s2364_s1 + $0x460] sm:$0xff] }
  0xc9   :  { %1276 = vmatmul.mubr.msk.f32.vlgmr.msra.gmra.mrb[0].mxu1 %vm203_vm6, %v1778_v6  ;;  %1662 = vmatprep.subr.bf16.mxu0 %v1768_v10 }
  0xca   :  { %1562 = vmatpush3.bf16.msra.mxu1 %v1561_v51  ;;  %1310 = vmatprep.mubr.msk.f32.mxu1 %vm1769_vm0, %v1770_v15  ;;  %v1016_v51 = vld [vmem:[%s2364_s1 + $0x468] sm:$0xff] }
  0xcb   :  { %1563 = vmatprep.subr.bf16.mxu1 %v1768_v10  ;;  %v1699_v52 = vpack.c.bf16 %v1016_v51, %v1015_v50 }
  0xcc   :  { %1664 = vmatpush3.bf16.msra.mxu0 %v1663_v56  ;;  %v766_v56 = vpop.permute.xlu0 %765 }
  0xcd   :  { %1665 = vmatprep.subr.bf16.mxu0 %v1768_v10  ;;  %vm767_vm9 = vcmp.eq.s32.totalorder %v766_v56, %v1933_v63 }
  0xce   :  { %1565 = vmatpush3.bf16.msra.mxu1 %v1564_v57 }
  0xcf   :  { %1566 = vmatprep.subr.bf16.mxu1 %v1768_v10 }
  0xd0   :  { %1667 = vmatpush3.bf16.msra.mxu0 %v1666_v62 }
  0xd1   :  { %1668 = vmatprep.subr.bf16.mxu0 %v1768_v10 }
  0xd2   :  { %1568 = vmatpush3.bf16.msra.mxu1 %v1567_v0 }
  0xd3   :  { %1569 = vmatprep.subr.bf16.mxu1 %v1768_v10 }
  0xd4   :  { %1670 = vmatpush3.bf16.msra.mxu0 %v1669_v5 }
  0xd5   :  { %1671 = vmatprep.subr.bf16.mxu0 %v1768_v10 }
  0xd6   :  { %1571 = vmatpush3.bf16.msra.mxu1 %v1570_v7 }
  0xd7   :  { %1572 = vmatprep.subr.bf16.mxu1 %v1768_v10 }
  0xd8   :  { %1673 = vmatpush3.bf16.msra.mxu0 %v1672_v13 }
  0xd9   :  { %1674 = vmatprep.subr.bf16.mxu0 %v1768_v10 }
  0xda   :  { %1574 = vmatpush3.bf16.msra.mxu1 %v1573_v14 }
  0xdb   :  { %1575 = vmatprep.subr.bf16.mxu1 %v1768_v10 }
  0xdc   :  { %1676 = vmatpush3.bf16.msra.mxu0 %v1675_v20 }
  0xdd   :  { %1677 = vmatprep.subr.bf16.mxu0 %v1768_v10 }
  0xde   :  { %1577 = vmatpush3.bf16.msra.mxu1 %v1576_v21 }
  0xdf   :  { %1578 = vmatprep.subr.bf16.mxu1 %v1768_v10 }
  0xe0   :  { %1679 = vmatpush3.bf16.msra.mxu0 %v1678_v26 }
  0xe1   :  { %1680 = vmatprep.subr.bf16.mxu0 %v1768_v10 }
  0xe2   :  { %1580 = vmatpush3.bf16.msra.mxu1 %v1579_v28 }
  0xe3   :  { %1581 = vmatprep.subr.bf16.mxu1 %v1768_v10  ;;  %1451 = vmatmul.mubr.msk.f32.vlgmr.msra.gmra.mrb[0].mxu0 %vm673_vm7, %v1778_v6 }
  0xe4   :  { %1682 = vmatpush3.bf16.msra.mxu0 %v1681_v33  ;;  %1485 = vmatprep.mubr.msk.f32.mxu0 %vm1769_vm0, %v1770_v15  ;;  %v1009_v15 = vld [vmem:[%s2364_s1 + $0x430] sm:$0xff]  ;;  %s1742_s1 = scalar_lea.vmem %s867_s10, 128 }
  0xe5   :  { %1683 = vmatprep.subr.bf16.mxu0 %v1768_v10  ;;  %v1690_v43 = vpack.c.bf16 %v1010_v42, %v1009_v15  ;;  %p1743_p0 = scmp.ne.s32.totalorder %s867_s10, %s1742_s1  ;;  %p1748_p2 = scmp.lt.s32.totalorder %s1742_s1, %s1742_s1 }
  0xe6   :  { %1583 = vmatpush3.bf16.msra.mxu1 %v1582_v34 }
  0xe7   :  { %p1749_p3 = por %p1748_p2, %p1747_p1 }
  0xe8   :  { %1685 = vmatpush3.bf16.msra.mxu0 %v1684_v38 }
  0xe9   :  { %1311 = vmatmul.mubr.msk.f32.vlgmr.msra.gmra.mrb[0].mxu1 %vm297_vm8, %v1778_v6  ;;  %1686 = vmatprep.subr.bf16.mxu0 %v1768_v10  ;;  %p1750_p4 = pnand %p1749_p3, %p1743_p0 }
  0xec   :  { %1688 = vmatpush3.bf16.msra.mxu0 %v1687_v41 }
  0xed   :  { %1689 = vmatprep.subr.bf16.mxu0 %v1768_v10 }
  0xf0   :  { %1691 = vmatpush3.bf16.msra.mxu0 %v1690_v43 }
  0xf1   :  { %1692 = vmatprep.subr.bf16.mxu0 %v1768_v10 }
  0xf4   :  { %1694 = vmatpush3.bf16.msra.mxu0 %v1693_v46 }
  0xf5   :  { %1695 = vmatprep.subr.bf16.mxu0 %v1768_v10 }
  0xf8   :  { %1697 = vmatpush3.bf16.msra.mxu0 %v1696_v49 }
  0xf9   :  { %1698 = vmatprep.subr.bf16.mxu0 %v1768_v10 }
  0xfc   :  { %1700 = vmatpush3.bf16.msra.mxu0 %v1699_v52 }
  0xfd   :  { %1701 = vmatprep.subr.bf16.mxu0 %v1768_v10 }
 0x100   :  { %1703 = vmatpush3.bf16.msra.mxu0 %v1702_v55 }
 0x103   :  { %1486 = vmatmul.mubr.msk.f32.vlgmr.msra.gmra.mrb[0].mxu0 %vm767_vm9, %v1778_v6 }
 0x1bc   :  { %v383_v57 = vpop.f32.mrb[0].mxu1 }
 0x1bd   :  { %v1312_v58 = vpop.f32.mrb[1].mxu1 }
 0x1d6   :  { %v853_v59 = vpop.f32.mrb[0].mxu0 }
 0x1d7   :  { %v1704_v60 = vadd.f32 %v853_v59, %v383_v57  ;;  %v1487_v61 = vpop.f32.mrb[1].mxu0 }
 0x1d9   :  { %859 = vst.msk [vmem:[#allocation2] sm:$0xff] %vm858_vm10, %v1704_v60 }
 0x1da   :  { %1753 = shalt.err (!%p1750_p4)
}
 0x1db   :  { %s1754_s13 = scalar_lea.hbm %s2365_s2, 128 }
 0x1dc   :  { %p1755_p5 = scmp.ne.s32.totalorder %s2365_s2, %s1754_s13  ;;  %p1758_p6 = scmp.lt.u32.totalorder %s1754_s13, %s2365_s2 }
 0x1de   :  { %p1760_p7 = pnand %p1758_p6, %p1755_p5 }
 0x1e0   :  { %1763 = shalt.err (!%p1760_p7)
}
 0x1e1   :  { %869 = dma.vmem_to_hbm [thread:$0]  %s867_s10, 128, %s2365_s2, [#allocation3]  }
 0x1e2   :  { %1764 = dma.done.wait [#allocation3], 128  }
 0x1e3   :  { %1765 = vsyncadd [#allocation3], 4294967168 }
 0x1e4   :  { %873 = vsyncpa [#allocation3], 1 }

</bundles_post_ra>
